<compile_context>
chip_gen: v6e
topology: v6e:2x2x1
jax: 0.10.0
libtpu: 0.0.40
codegen_flags: <defaults>
</compile_context>

<pallas_src>
import functools

import numpy as np
import jax
import jax.numpy as jnp
from jax.experimental import pallas as pl
from jax.experimental.pallas import tpu as pltpu


def _round_up(x: int, m: int) -> int:
    return ((x + m - 1) // m) * m


def _cdiv(a: int, b: int) -> int:
    return (a + b - 1) // b


@functools.lru_cache(maxsize=64)
def _interp_weights_np(l_in: int, l_out: int, k_pad: int, l_out_pad: int):
    """float32 *numpy* weight matrix Wt of shape (k_pad, l_out_pad).

    out[:, i] = x @ Wt[:, i] reproduces
    torch.nn.functional.interpolate(x, size=l_out, mode='linear',
                                    align_corners=False).
    Rows >= l_in and columns >= l_out are zero (K / lane padding).
    Returned as numpy on purpose: a jnp array created inside a jit trace must
    not be cached (that was the UnexpectedTracerError in the previous version).
    """
    scale = l_in / l_out
    i = np.arange(l_out, dtype=np.float64)
    src = np.maximum((i + 0.5) * scale - 0.5, 0.0)           # PyTorch clamps < 0 to 0
    idx0 = np.clip(np.floor(src).astype(np.int64), 0, l_in - 1)
    idx1 = np.minimum(idx0 + 1, l_in - 1)
    w1 = (src - idx0).astype(np.float32)
    w0 = (1.0 - w1).astype(np.float32)

    wt = np.zeros((k_pad, l_out_pad), dtype=np.float32)
    cols = np.arange(l_out)
    np.add.at(wt, (idx0, cols), w0)
    np.add.at(wt, (idx1, cols), w1)
    return wt


def _vmem_capacity_bytes() -> int:
    try:
        info = pltpu.get_tpu_info()
        for name in ("vmem_capacity_bytes", "vmem_bytes", "vmem_size_bytes"):
            cap = getattr(info, name, None)
            if cap:
                return int(cap)
    except Exception:
        pass
    return 64 * 1024 * 1024          # conservative (v7x physical VMEM)


def _interp_matmul_kernel(x_ref, wt_ref, o_ref, acc_ref, *, k_rem):
    # x_ref:  (TM, TK)   row x K tile of the flattened (M, L_in) input
    # wt_ref: (TK, TN)   K x output-length tile of the weight matrix (f32)
    # o_ref:  (TM, TN)
    # acc_ref:(TM, TN)   f32 accumulator (resident across the K grid axis)
    k = pl.program_id(2)
    nk = pl.num_programs(2)

    @pl.when(k == 0)
    def _init():
        acc_ref[...] = jnp.zeros_like(acc_ref)

    # Compute in f32 regardless of activation dtype: matches PyTorch's float
    # coefficient math (weights never rounded to bf16); the upcast is VMEM-local.
    x = x_ref[...].astype(jnp.float32)

    if k_rem is not None:
        # Ragged last K block: zero the columns beyond L_in so uninitialized
        # VMEM in the OOB region cannot contribute (even 0 * NaN would).
        col = jax.lax.broadcasted_iota(jnp.int32, x.shape, 1)
        limit = jnp.where(k == nk - 1, k_rem, x.shape[1])
        x = jnp.where(col < limit, x, 0.0)

    acc_ref[...] += jnp.dot(x, wt_ref[...], preferred_element_type=jnp.float32)

    @pl.when(k == nk - 1)
    def _store():
        o_ref[...] = acc_ref[...].astype(o_ref.dtype)


@functools.partial(jax.jit, static_argnums=1)
def interpolate_linear(x, size: int):
    """x: (B, C, L_in) -> (B, C, size); same semantics as
    F.interpolate(x, size=size, mode='linear', align_corners=False)."""
    B, C, L_in = x.shape
    L_out = int(size)
    M = B * C
    L_out_pad = _round_up(L_out, 128)        # lane-dense output (unmasked stores)
    x_item = x.dtype.itemsize

    vmem_cap = _vmem_capacity_bytes()
    budget = (vmem_cap * 3) // 4             # ~96 MiB v5e/v6e, ~48 MiB v7x
    vmem_limit = (vmem_cap * 7) // 8

    def _fits(tm, tn, tk):
        return (2 * tm * tk * x_item          # double-buffered x tile
                + 2 * tk * tn * 4             # double-buffered Wt tile (f32)
                + 2 * tm * tn * x_item        # double-buffered out tile
                + tm * tn * 4                 # f32 accumulator scratch
                ) <= budget

    # Row tile: as big as possible, but leave >= 2 row tiles when M allows so
    # both v7x TensorCores get work on the leading "parallel" axis.
    if M >= 16:
        TM = min(512, _round_up(_cdiv(M, 2), 8))
    else:
        TM = _round_up(max(M, 1), 8)
    TN = L_out_pad                            # full Wt resident -> fetched once
    TK = L_in

    # VMEM fit waterfall: TM (>=128) -> TN (>=128) -> K tiling -> TM (>=8).
    tm_floor = max(8, min(128, _round_up(M, 8)))
    while TM > tm_floor and not _fits(TM, TN, TK):
        TM = max(tm_floor, _round_up(TM // 2, 8))
    while TN > 128 and not _fits(TM, TN, TK):
        TN = max(128, _round_up(TN // 2, 128))
    if not _fits(TM, TN, TK) and L_in > 128:
        TK = _round_up(_cdiv(_round_up(L_in, 128), 2), 128)
        while TK > 128 and not _fits(TM, TN, TK):
            TK = max(128, _round_up(TK // 2, 128))
    while TM > 8 and not _fits(TM, TN, TK):
        TM = max(8, _round_up(TM // 2, 8))

    if TK >= L_in:
        TK, K_pad = L_in, L_in
    else:
        K_pad = _round_up(L_in, TK)           # Wt rows beyond L_in are real zeros

    grid = (_cdiv(M, TM), _cdiv(L_out_pad, TN), K_pad // TK)
    k_rem = None
    if grid[2] > 1 and L_in % TK != 0:
        k_rem = L_in - (grid[2] - 1) * TK     # valid columns in the last K block

    wt = jnp.asarray(_interp_weights_np(L_in, L_out, K_pad, L_out_pad))
    x2d = x.reshape(M, L_in)                  # no pad, no dtype cast: read once

    kernel = functools.partial(_interp_matmul_kernel, k_rem=k_rem)

    cost = pl.CostEstimate(
        flops=2 * M * L_in * L_out_pad,
        transcendentals=0,
        bytes_accessed=(M * L_in * x_item
                        + M * L_out_pad * x_item
                        + K_pad * L_out_pad * 4),
    )

    out2d = pl.pallas_call(
        kernel,
        out_shape=jax.ShapeDtypeStruct((M, L_out_pad), x.dtype),
        grid_spec=pltpu.PrefetchScalarGridSpec(
            num_scalar_prefetch=0,
            grid=grid,
            in_specs=[
                pl.BlockSpec((TM, TK), lambda i, j, k: (i, k)),   # x row/K tile
                pl.BlockSpec((TK, TN), lambda i, j, k: (k, j)),   # Wt tile (const
                                                                  # across i -> no
                                                                  # re-DMA per row)
            ],
            out_specs=pl.BlockSpec((TM, TN), lambda i, j, k: (i, j)),
            scratch_shapes=[pltpu.VMEM((TM, TN), jnp.float32)],
        ),
        compiler_params=pltpu.CompilerParams(
            dimension_semantics=("parallel", "parallel", "arbitrary"),
            vmem_limit_bytes=int(vmem_limit),
        ),
        cost_estimate=cost,
    )(x2d, wt)

    return out2d[:, :L_out].reshape(B, C, L_out)


if __name__ == "__main__":
    key = jax.random.PRNGKey(0)
    B, C, L_in = 2, 4, 8
    size = 16                                  # module's __init__ `size`; mode='linear'

    x = jax.random.normal(key, (B, C, L_in), dtype=jnp.float32)
    out = jax.block_until_ready(interpolate_linear(x, size))

    # Independent numpy reference of PyTorch's align_corners=False linear interp.
    scale = L_in / size
    pos = np.maximum((np.arange(size) + 0.5) * scale - 0.5, 0.0)
    i0 = np.clip(np.floor(pos).astype(np.int64), 0, L_in - 1)
    i1 = np.minimum(i0 + 1, L_in - 1)
    w1 = (pos - i0).astype(np.float32)
    w0 = (1.0 - w1).astype(np.float32)
    xn = np.asarray(x)
    ref = xn[:, :, i0] * w0 + xn[:, :, i1] * w1

    assert out.shape == (B, C, size)
    assert np.allclose(np.asarray(out), ref, atol=1e-5, rtol=1e-5)

    print("KERNEL_OK")
</pallas_src>

<mosaic_0001>
module attributes {stable_mosaic.version = 11 : i64} {
  func.func @_interp_matmul_kernel(%arg0: i32, %arg1: i32, %arg2: i32, %arg3: memref<8x8xf32, #tpu.memory_space<vmem>>, %arg4: memref<8x128xf32, #tpu.memory_space<vmem>>, %arg5: memref<8x128xf32, #tpu.memory_space<vmem>>, %arg6: memref<8x128xf32, #tpu.memory_space<vmem>>) attributes {dimension_semantics = [#tpu.dimension_semantics<parallel>, #tpu.dimension_semantics<parallel>, #tpu.dimension_semantics<arbitrary>], iteration_bounds = array<i64: 1, 1, 1>, scalar_prefetch = 0 : i64, scratch_operands = 1 : i64, tpu.core_type = #tpu.core_type<tc>, window_params = [{transform_indices = @transform_0, window_bounds = array<i64: 8, 8>}, {transform_indices = @transform_1, window_bounds = array<i64: 8, 128>}, {transform_indices = @transform_2, window_bounds = array<i64: 8, 128>}]} {
    %c0_i32 = arith.constant 0 : i32
    %0 = arith.cmpi eq, %arg2, %c0_i32 : i32
    %1 = arith.extui %0 : i1 to i32
    %c0_i32_0 = arith.constant 0 : i32
    %2 = arith.cmpi ne, %1, %c0_i32_0 : i32
    scf.if %2 {
      %cst_10 = arith.constant 0.000000e+00 : f32
      %12 = vector.broadcast %cst_10 : f32 to vector<8x128xf32>
      %c0_11 = arith.constant 0 : index
      %c0_12 = arith.constant 0 : index
      %13 = vector.load %arg6[%c0_11, %c0_12] : memref<8x128xf32, #tpu.memory_space<vmem>>, vector<8x128xf32>
      tpu.vector_store %arg6[%c0_11, %c0_12], %12 {strides = array<i32>} : memref<8x128xf32, #tpu.memory_space<vmem>>, vector<8x128xf32>,
    } else {
    }
    %c0 = arith.constant 0 : index
    %c0_1 = arith.constant 0 : index
    %3 = vector.load %arg3[%c0, %c0_1] : memref<8x8xf32, #tpu.memory_space<vmem>>, vector<8x8xf32>
    %c0_2 = arith.constant 0 : index
    %c0_3 = arith.constant 0 : index
    %4 = vector.load %arg6[%c0_2, %c0_3] : memref<8x128xf32, #tpu.memory_space<vmem>>, vector<8x128xf32>
    %c0_4 = arith.constant 0 : index
    %c0_5 = arith.constant 0 : index
    %5 = vector.load %arg4[%c0_4, %c0_5] : memref<8x128xf32, #tpu.memory_space<vmem>>, vector<8x128xf32>
    %cst = arith.constant dense<0.000000e+00> : vector<8x128xf32>
    %6 = tpu.matmul %3, %5, %cst {dimension_numbers = #tpu.dot_dimension_numbers<[1], [0], [0], [1], [0, 0, 1, 1], [], []>} : vector<8x8xf32>, vector<8x128xf32>, vector<8x128xf32> -> vector<8x128xf32>
    %7 = arith.addf %4, %6 : vector<8x128xf32>
    %c0_6 = arith.constant 0 : index
    %c0_7 = arith.constant 0 : index
    %8 = vector.load %arg6[%c0_6, %c0_7] : memref<8x128xf32, #tpu.memory_space<vmem>>, vector<8x128xf32>
    tpu.vector_store %arg6[%c0_6, %c0_7], %7 {strides = array<i32>} : memref<8x128xf32, #tpu.memory_space<vmem>>, vector<8x128xf32>,
    %c0_i32_8 = arith.constant 0 : i32
    %9 = arith.cmpi eq, %arg2, %c0_i32_8 : i32
    %10 = arith.extui %9 : i1 to i32
    %c0_i32_9 = arith.constant 0 : i32
    %11 = arith.cmpi ne, %10, %c0_i32_9 : i32
    scf.if %11 {
      %c0_10 = arith.constant 0 : index
      %c0_11 = arith.constant 0 : index
      %12 = vector.load %arg6[%c0_10, %c0_11] : memref<8x128xf32, #tpu.memory_space<vmem>>, vector<8x128xf32>
      %c0_12 = arith.constant 0 : index
      %c0_13 = arith.constant 0 : index
      %13 = vector.load %arg5[%c0_12, %c0_13] : memref<8x128xf32, #tpu.memory_space<vmem>>, vector<8x128xf32>
      tpu.vector_store %arg5[%c0_12, %c0_13], %12 {strides = array<i32>} : memref<8x128xf32, #tpu.memory_space<vmem>>, vector<8x128xf32>,
    } else {
    }
    return
  }
  func.func @transform_0(%arg0: i32, %arg1: i32, %arg2: i32) -> (i32, i32) {
    %c0_i32 = arith.constant 0 : i32
    return %arg0, %arg2 : i32, i32
  }
  func.func @transform_1(%arg0: i32, %arg1: i32, %arg2: i32) -> (i32, i32) {
    %c0_i32 = arith.constant 0 : i32
    return %arg2, %arg1 : i32, i32
  }
  func.func @transform_2(%arg0: i32, %arg1: i32, %arg2: i32) -> (i32, i32) {
    %c0_i32 = arith.constant 0 : i32
    return %arg0, %arg1 : i32, i32
  }
}

</mosaic_0001>

<bundles_post_ra>
// kernel: interpolate_linear.1
= control target key start
LH: loop header
LB: loop body
LE: loop exit
PB: predicated region body
PF: predicated region fallthrough
CT: control target
= control target key end

     0   :  { %7 = vsyncpa [#allocation4], 0  ;;  %s249_s0 = inlined_call_operand.hbm [shape: f32[8,8], index: 0, kind: input, shape index: {}]   ;;  %s250_s1 = inlined_call_operand.hbm [shape: f32[8,128], index: 1, kind: input, shape index: {}]   ;;  %s251_s2 = inlined_call_operand.hbm [shape: f32[8,128], index: 2, kind: output, shape index: {}]  }
   0x1   :  { %8 = vsyncpa [#allocation7], 0 }
   0x2   :  { %9 = vsyncpa [#allocation5], 0  ;;  %s220_s9 = smov [#allocation3]   ;;  %s221_s11 = smov [#allocation6]  }
   0x3   :  { %s16_s10 = sshll.u32 %s220_s9, 4  ;;  %s26_s12 = sshll.u32 %s221_s11, 4  ;;  %s17_s10 = int_to_ptr.vmem [resolvable:$true] %s16_s10  ;;  %s27_s12 = int_to_ptr.vmem [resolvable:$true] %s26_s12 }
   0x4   :  { %s162_s13 = scalar_lea.vmem %s17_s10, 128  ;;  %p167_p1 = scmp.lt.s32.totalorder %s17_s10, %s17_s10 }
   0x5   :  { %p163_p0 = scmp.ne.s32.totalorder %s17_s10, %s162_s13  ;;  %p168_p2 = scmp.lt.s32.totalorder %s162_s13, %s162_s13 }
   0x7   :  { %p169_p3 = por %p168_p2, %p167_p1 }
   0x9   :  { %p170_p4 = pnand %p169_p3, %p163_p0 }
   0xb   :  { %173 = shalt.err (!%p170_p4)
}
   0xc   :  { %19 = dma.hbm_to_vmem [thread:$0]  %s249_s0, 128, %s17_s10, [#allocation4]  }
   0xd   :  { %s182_s16 = scalar_lea.vmem %s27_s12, 128  ;;  %p187_p6 = scmp.lt.s32.totalorder %s27_s12, %s27_s12 }
   0xe   :  { %p183_p5 = scmp.ne.s32.totalorder %s27_s12, %s182_s16  ;;  %p188_p7 = scmp.lt.s32.totalorder %s182_s16, %s182_s16 }
  0x10   :  { %p189_p8 = por %p188_p7, %p187_p6 }
  0x12   :  { %p190_p9 = pnand %p189_p8, %p183_p5 }
  0x14   :  { %193 = shalt.err (!%p190_p9)
}
  0x15   :  { %29 = dma.hbm_to_vmem [thread:$0]  %s250_s1, 128, %s27_s12, [#allocation7]  }
  0x16   :  { %214 = dma.done.wait [#allocation4], 128  }
  0x17   :  { %215 = vsyncadd [#allocation4], 4294967168 }
  0x18   :  { %216 = dma.done.wait [#allocation7], 128  }
  0x19   :  { %217 = vsyncadd [#allocation7], 4294967168  ;;  %v222_v0 = vmov 0.0   ;;  %vm223_vm0 = vmmov 0   ;;  %vm44_vm1 = vcmask 64512   ;;  %v43_v1 = vld [vmem:[#allocation6] sm:$0xff] }
  0x1a   :  { %144 = vmatprep.subr.mxu0 %v222_v0  ;;  %146 = vmatprep.mubr.msk.f32.mxu0 %vm223_vm0, %v222_v0  ;;  %v41_v2 = vld [vmem:[#allocation3] sm:$0xff]  ;;  %s224_s0 = smov [#allocation8]  }
  0x1b   :  { %145 = vmatpush3.msra.mxu0 %v43_v1  ;;  %s131_s19 = sshll.u32 %s224_s0, 4  ;;  %s132_s19 = int_to_ptr.vmem [resolvable:$true] %s131_s19 }
  0x1c   :  { %147 = vmatmul.mubr.msk.f32.vlgmr.msra.gmra.mxu0 %vm44_vm1, %v41_v2  ;;  %s194_s1 = scalar_lea.vmem %s132_s19, 128  ;;  %p199_p11 = scmp.lt.s32.totalorder %s132_s19, %s132_s19 }
  0x1d   :  { %p195_p10 = scmp.ne.s32.totalorder %s132_s19, %s194_s1  ;;  %p200_p12 = scmp.lt.s32.totalorder %s194_s1, %s194_s1 }
  0x1f   :  { %p201_p13 = por %p200_p12, %p199_p11 }
  0x21   :  { %p202_p0 = pnand %p201_p13, %p195_p10 }
  0xdc   :  { %v114_v3 = vpop.f32.mrf.mxu0 }
  0xdd   :  { %124 = vst [vmem:[#allocation8] sm:$0xff] %v114_v3 }
  0xde   :  { %v148_v4 = vpop.f32.mrf.mxu0 }
  0xdf   :  { %205 = shalt.err (!%p202_p0)
}
  0xe0   :  { %134 = dma.vmem_to_hbm [thread:$0]  %s132_s19, 128, %s251_s2, [#allocation5]  }
  0xe1   :  { %218 = dma.done.wait [#allocation5], 128  }
  0xe2   :  { %219 = vsyncadd [#allocation5], 4294967168 }
  0xe3   :  { %138 = vsyncpa [#allocation4], 1 }
  0xe4   :  { %139 = vsyncpa [#allocation7], 1 }
  0xe5   :  { %140 = vsyncpa [#allocation5], 1 }

</bundles_post_ra>
